<compile_context>
chip_gen: v5e
topology: v5e:2x2
jax: 0.10.0
libtpu: 0.0.40
codegen_flags: <defaults>
</compile_context>

<pallas_src>
import jax
import jax.numpy as jnp
from jax.experimental import pallas as pl
from jax.experimental.pallas import tpu as pltpu


def _round_up(x, m):
    return ((x + m - 1) // m) * m


def mlp_omics_kernel(x_ref, w1_ref, b1_ref, w2_ref, b2_ref, w3_ref, b3_ref,
                     out_ref, acc_ref):
    """One (batch-tile, K-tile) grid step.

    Layer 1 is K-tiled: partial x-tile @ W1-tile products accumulate into an
    f32 VMEM scratch.  Layers 2/3 (small, VMEM-resident weights) plus all bias
    adds / ReLUs run only on the last K step.
    """
    k = pl.program_id(1)

    @pl.when(k == 0)
    def _():
        acc_ref[...] = jnp.zeros_like(acc_ref)

    # Layer-1 partial product on the MXU (bf16 operands, f32 accumulation).
    acc_ref[...] += jnp.dot(x_ref[...], w1_ref[...],
                            preferred_element_type=jnp.float32)

    @pl.when(k == pl.num_programs(1) - 1)
    def _():
        # Epilogue: f32 elementwise math on the accumulator (v5e has no bf16
        # VPU path).  Dropout = identity in eval mode.
        h1 = jnp.maximum(acc_ref[...] + b1_ref[...], 0.0)            # (tm, H)

        # Layer 2: Linear + ReLU.
        h2 = jnp.dot(h1.astype(w2_ref.dtype), w2_ref[...],
                     preferred_element_type=jnp.float32)
        h2 = jnp.maximum(h2 + b2_ref[...], 0.0)

        # Output head: Linear -> logits (lane-dense padded columns).
        logits = jnp.dot(h2.astype(w3_ref.dtype), w3_ref[...],
                         preferred_element_type=jnp.float32)
        out_ref[...] = (logits + b3_ref[...]).astype(out_ref.dtype)


def mlp_omics_forward(x, params, *, tm=None, tk=None):
    """x: (B, input_dim) float32.  params: pre-transposed weights/biases.

    Returns (B, n_classes) float32 logits (eval-mode semantics).
    """
    w1, b1 = params["w1"], params["b1"]
    w2, b2 = params["w2"], params["b2"]
    w3, b3 = params["w3"], params["b3"]

    B, K = x.shape
    H = w1.shape[1]
    C = w3.shape[1]

    # MXU-friendly tile defaults, clamped to the (padded) problem size.
    if tm is None:
        tm = min(256, _round_up(B, 8))
    if tk is None:
        tk = min(512, _round_up(K, 128))

    B_pad = _round_up(B, tm)
    K_pad = _round_up(K, tk)
    C_pad = _round_up(C, 128)            # lane-dense output block

    bf16 = jnp.bfloat16
    # bf16 streams for the bandwidth-dominant matmul operands; biases stay f32.
    x_p = jnp.pad(x, ((0, B_pad - B), (0, K_pad - K))).astype(bf16)
    w1_p = jnp.pad(w1, ((0, K_pad - K), (0, 0))).astype(bf16)
    w2_p = w2.astype(bf16)
    w3_p = jnp.pad(w3, ((0, 0), (0, C_pad - C))).astype(bf16)
    b1_p = b1.astype(jnp.float32)
    b2_p = b2.astype(jnp.float32)
    b3_p = jnp.pad(b3, ((0, 0), (0, C_pad - C))).astype(jnp.float32)

    nb, nk = B_pad // tm, K_pad // tk

    # VMEM budget: double-buffered streaming tiles + resident small weights
    # + f32 accumulator + headroom; capped below v7x's 64 MiB physical VMEM.
    vmem_bytes = int(
        2 * (tm * tk + tk * H) * 2          # x / w1 bf16 tiles (2 buffers each)
        + 2 * (H * H + H * C_pad) * 2       # w2 / w3 bf16 blocks
        + 2 * (H + C_pad) * 4               # biases (f32)
        + 2 * tm * C_pad * 4                # output block (f32)
        + tm * H * 4                        # f32 accumulator scratch
        + (4 << 20))                        # headroom
    vmem_bytes = max(min(vmem_bytes, 48 << 20), 16 << 20)

    cost = pl.CostEstimate(
        flops=2 * B_pad * (K_pad * H + H * H + H * C_pad),
        transcendentals=0,
        bytes_accessed=(x_p.size + w1_p.size + w2_p.size + w3_p.size) * 2
        + (b1_p.size + b2_p.size + b3_p.size) * 4
        + B_pad * C_pad * 4,
    )

    out = pl.pallas_call(
        mlp_omics_kernel,
        out_shape=jax.ShapeDtypeStruct((B_pad, C_pad), jnp.float32),
        grid=(nb, nk),
        in_specs=[
            pl.BlockSpec((tm, tk), lambda i, k: (i, k)),       # x tile
            pl.BlockSpec((tk, H), lambda i, k: (k, 0)),        # W1 K-tile
            pl.BlockSpec((1, H), lambda i, k: (0, 0)),         # b1
            pl.BlockSpec((H, H), lambda i, k: (0, 0)),         # W2
            pl.BlockSpec((1, H), lambda i, k: (0, 0)),         # b2
            pl.BlockSpec((H, C_pad), lambda i, k: (0, 0)),     # W3 (padded)
            pl.BlockSpec((1, C_pad), lambda i, k: (0, 0)),     # b3 (padded)
        ],
        out_specs=pl.BlockSpec((tm, C_pad), lambda i, k: (i, 0)),
        scratch_shapes=[pltpu.VMEM((tm, H), jnp.float32)],
        compiler_params=pltpu.CompilerParams(
            dimension_semantics=("parallel", "arbitrary"),
            vmem_limit_bytes=vmem_bytes),
        cost_estimate=cost,
    )(x_p, w1_p, b1_p, w2_p, b2_p, w3_p, b3_p)

    return out[:B, :C]


def init_params(key, input_dim, projection_dim=512, n_classes=4):
    """Deterministic init mirroring nn.Linear default (uniform +-1/sqrt(fan_in)).

    Weights are stored transposed: (in_features, out_features)."""
    hidden = projection_dim // 2
    ks = jax.random.split(key, 6)

    def linear(kw, kb, fan_in, fan_out):
        bound = 1.0 / jnp.sqrt(fan_in)
        w = jax.random.uniform(kw, (fan_in, fan_out), jnp.float32, -bound, bound)
        b = jax.random.uniform(kb, (1, fan_out), jnp.float32, -bound, bound)
        return w, b

    w1, b1 = linear(ks[0], ks[1], input_dim, hidden)
    w2, b2 = linear(ks[2], ks[3], hidden, hidden)
    w3, b3 = linear(ks[4], ks[5], hidden, n_classes)
    return {"w1": w1, "b1": b1, "w2": w2, "b2": b2, "w3": w3, "b3": b3}


def reference_forward(x, p):
    """Pure-JAX reference with matched bf16 operand / f32 accumulate precision."""
    bf, f32 = jnp.bfloat16, jnp.float32
    h1 = jnp.maximum(
        jnp.dot(x.astype(bf), p["w1"].astype(bf), preferred_element_type=f32)
        + p["b1"], 0.0)
    h2 = jnp.maximum(
        jnp.dot(h1.astype(bf), p["w2"].astype(bf), preferred_element_type=f32)
        + p["b2"], 0.0)
    return jnp.dot(h2.astype(bf), p["w3"].astype(bf),
                   preferred_element_type=f32) + p["b3"]


if __name__ == "__main__":
    key = jax.random.PRNGKey(0)
    k_x, k_p = jax.random.split(key)

    # Small shapes consistent with the module defaults:
    # projection_dim=512 -> hidden=256, n_classes=4, modest omics-like input.
    B, input_dim, projection_dim, n_classes = 32, 600, 512, 4

    x = jax.random.normal(k_x, (B, input_dim), dtype=jnp.float32)
    params = init_params(k_p, input_dim, projection_dim, n_classes)

    # Small tiles so both grid axes (parallel batch tiles x K reduction tiles)
    # are exercised even at these toy shapes: grid = (2, 3).
    logits = mlp_omics_forward(x, params, tm=16, tk=256)
    logits = jax.block_until_ready(logits)

    ref = reference_forward(x, params)
    assert logits.shape == (B, n_classes)
    assert jnp.allclose(logits, ref, atol=5e-3, rtol=5e-3), "mismatch vs reference"

    print("KERNEL_OK")
</pallas_src>

<mosaic_0001>
module attributes {stable_mosaic.version = 11 : i64} {
  func.func @mlp_omics_kernel(%arg0: i32, %arg1: i32, %arg2: memref<16x256xbf16, #tpu.memory_space<vmem>>, %arg3: memref<256x256xbf16, #tpu.memory_space<vmem>>, %arg4: memref<1x256xf32, #tpu.memory_space<vmem>>, %arg5: memref<256x256xbf16, #tpu.memory_space<vmem>>, %arg6: memref<1x256xf32, #tpu.memory_space<vmem>>, %arg7: memref<256x128xbf16, #tpu.memory_space<vmem>>, %arg8: memref<1x128xf32, #tpu.memory_space<vmem>>, %arg9: memref<16x128xf32, #tpu.memory_space<vmem>>, %arg10: memref<16x256xf32, #tpu.memory_space<vmem>>) attributes {dimension_semantics = [#tpu.dimension_semantics<parallel>, #tpu.dimension_semantics<arbitrary>], iteration_bounds = array<i64: 2, 3>, scalar_prefetch = 0 : i64, scratch_operands = 1 : i64, tpu.core_type = #tpu.core_type<tc>, window_params = [{transform_indices = @transform_0, window_bounds = array<i64: 16, 256>}, {transform_indices = @transform_1, window_bounds = array<i64: 256, 256>}, {pipeline_mode = #tpu.pipeline_mode<synchronous>, transform_indices = @transform_2, window_bounds = array<i64: 1, 256>}, {pipeline_mode = #tpu.pipeline_mode<synchronous>, transform_indices = @transform_3, window_bounds = array<i64: 256, 256>}, {pipeline_mode = #tpu.pipeline_mode<synchronous>, transform_indices = @transform_4, window_bounds = array<i64: 1, 256>}, {pipeline_mode = #tpu.pipeline_mode<synchronous>, transform_indices = @transform_5, window_bounds = array<i64: 256, 128>}, {pipeline_mode = #tpu.pipeline_mode<synchronous>, transform_indices = @transform_6, window_bounds = array<i64: 1, 128>}, {transform_indices = @transform_7, window_bounds = array<i64: 16, 128>}]} {
    %c0_i32 = arith.constant 0 : i32
    %0 = arith.cmpi eq, %arg1, %c0_i32 : i32
    %1 = arith.extui %0 : i1 to i32
    %c0_i32_0 = arith.constant 0 : i32
    %2 = arith.cmpi ne, %1, %c0_i32_0 : i32
    scf.if %2 {
      %cst_9 = arith.constant 0.000000e+00 : f32
      %12 = vector.broadcast %cst_9 : f32 to vector<16x256xf32>
      %c0_10 = arith.constant 0 : index
      %c0_11 = arith.constant 0 : index
      %13 = vector.load %arg10[%c0_10, %c0_11] : memref<16x256xf32, #tpu.memory_space<vmem>>, vector<16x256xf32>
      tpu.vector_store %arg10[%c0_10, %c0_11], %12 {strides = array<i32>} : memref<16x256xf32, #tpu.memory_space<vmem>>, vector<16x256xf32>,
    } else {
    }
    %c0 = arith.constant 0 : index
    %c0_1 = arith.constant 0 : index
    %3 = vector.load %arg10[%c0, %c0_1] : memref<16x256xf32, #tpu.memory_space<vmem>>, vector<16x256xf32>
    %c0_2 = arith.constant 0 : index
    %c0_3 = arith.constant 0 : index
    %4 = vector.load %arg2[%c0_2, %c0_3] : memref<16x256xbf16, #tpu.memory_space<vmem>>, vector<16x256xbf16>
    %c0_4 = arith.constant 0 : index
    %c0_5 = arith.constant 0 : index
    %5 = vector.load %arg3[%c0_4, %c0_5] : memref<256x256xbf16, #tpu.memory_space<vmem>>, vector<256x256xbf16>
    %cst = arith.constant dense<0.000000e+00> : vector<16x256xf32>
    %6 = tpu.matmul %4, %5, %cst {dimension_numbers = #tpu.dot_dimension_numbers<[1], [0], [0], [1], [0, 0, 1, 1], [], []>} : vector<16x256xbf16>, vector<256x256xbf16>, vector<16x256xf32> -> vector<16x256xf32>
    %7 = arith.addf %3, %6 : vector<16x256xf32>
    %c0_6 = arith.constant 0 : index
    %c0_7 = arith.constant 0 : index
    %8 = vector.load %arg10[%c0_6, %c0_7] : memref<16x256xf32, #tpu.memory_space<vmem>>, vector<16x256xf32>
    tpu.vector_store %arg10[%c0_6, %c0_7], %7 {strides = array<i32>} : memref<16x256xf32, #tpu.memory_space<vmem>>, vector<16x256xf32>,
    %c2_i32 = arith.constant 2 : i32
    %9 = arith.cmpi eq, %arg1, %c2_i32 : i32
    %10 = arith.extui %9 : i1 to i32
    %c0_i32_8 = arith.constant 0 : i32
    %11 = arith.cmpi ne, %10, %c0_i32_8 : i32
    scf.if %11 {
      %c0_9 = arith.constant 0 : index
      %c0_10 = arith.constant 0 : index
      %12 = vector.load %arg10[%c0_9, %c0_10] : memref<16x256xf32, #tpu.memory_space<vmem>>, vector<16x256xf32>
      %c0_11 = arith.constant 0 : index
      %c0_12 = arith.constant 0 : index
      %13 = vector.load %arg4[%c0_11, %c0_12] : memref<1x256xf32, #tpu.memory_space<vmem>>, vector<1x256xf32>
      %14 = vector.broadcast %13 : vector<1x256xf32> to vector<16x256xf32>
      %15 = arith.addf %12, %14 : vector<16x256xf32>
      %cst_13 = arith.constant 0.000000e+00 : f32
      %16 = vector.broadcast %cst_13 : f32 to vector<16x256xf32>
      %17 = arith.maximumf %15, %16 : vector<16x256xf32>
      %18 = arith.truncf %17 : vector<16x256xf32> to vector<16x256xbf16>
      %c0_14 = arith.constant 0 : index
      %c0_15 = arith.constant 0 : index
      %19 = vector.load %arg5[%c0_14, %c0_15] : memref<256x256xbf16, #tpu.memory_space<vmem>>, vector<256x256xbf16>
      %cst_16 = arith.constant dense<0.000000e+00> : vector<16x256xf32>
      %20 = tpu.matmul %18, %19, %cst_16 {dimension_numbers = #tpu.dot_dimension_numbers<[1], [0], [0], [1], [0, 0, 1, 1], [], []>} : vector<16x256xbf16>, vector<256x256xbf16>, vector<16x256xf32> -> vector<16x256xf32>
      %c0_17 = arith.constant 0 : index
      %c0_18 = arith.constant 0 : index
      %21 = vector.load %arg6[%c0_17, %c0_18] : memref<1x256xf32, #tpu.memory_space<vmem>>, vector<1x256xf32>
      %22 = vector.broadcast %21 : vector<1x256xf32> to vector<16x256xf32>
      %23 = arith.addf %20, %22 : vector<16x256xf32>
      %cst_19 = arith.constant 0.000000e+00 : f32
      %24 = vector.broadcast %cst_19 : f32 to vector<16x256xf32>
      %25 = arith.maximumf %23, %24 : vector<16x256xf32>
      %26 = arith.truncf %25 : vector<16x256xf32> to vector<16x256xbf16>
      %c0_20 = arith.constant 0 : index
      %c0_21 = arith.constant 0 : index
      %27 = vector.load %arg7[%c0_20, %c0_21] : memref<256x128xbf16, #tpu.memory_space<vmem>>, vector<256x128xbf16>
      %cst_22 = arith.constant dense<0.000000e+00> : vector<16x128xf32>
      %28 = tpu.matmul %26, %27, %cst_22 {dimension_numbers = #tpu.dot_dimension_numbers<[1], [0], [0], [1], [0, 0, 1, 1], [], []>} : vector<16x256xbf16>, vector<256x128xbf16>, vector<16x128xf32> -> vector<16x128xf32>
      %c0_23 = arith.constant 0 : index
      %c0_24 = arith.constant 0 : index
      %29 = vector.load %arg8[%c0_23, %c0_24] : memref<1x128xf32, #tpu.memory_space<vmem>>, vector<1x128xf32>
      %30 = vector.broadcast %29 : vector<1x128xf32> to vector<16x128xf32>
      %31 = arith.addf %28, %30 : vector<16x128xf32>
      %c0_25 = arith.constant 0 : index
      %c0_26 = arith.constant 0 : index
      %32 = vector.load %arg9[%c0_25, %c0_26] : memref<16x128xf32, #tpu.memory_space<vmem>>, vector<16x128xf32>
      tpu.vector_store %arg9[%c0_25, %c0_26], %31 {strides = array<i32>} : memref<16x128xf32, #tpu.memory_space<vmem>>, vector<16x128xf32>,
    } else {
    }
    return
  }
  func.func @transform_0(%arg0: i32, %arg1: i32) -> (i32, i32) {
    %c0_i32 = arith.constant 0 : i32
    return %arg0, %arg1 : i32, i32
  }
  func.func @transform_1(%arg0: i32, %arg1: i32) -> (i32, i32) {
    %c0_i32 = arith.constant 0 : i32
    %c0_i32_0 = arith.constant 0 : i32
    return %arg1, %c0_i32 : i32, i32
  }
  func.func @transform_2(%arg0: i32, %arg1: i32) -> (i32, i32) {
    %c0_i32 = arith.constant 0 : i32
    %c0_i32_0 = arith.constant 0 : i32
    %c0_i32_1 = arith.constant 0 : i32
    return %c0_i32, %c0_i32_0 : i32, i32
  }
  func.func @transform_3(%arg0: i32, %arg1: i32) -> (i32, i32) {
    %c0_i32 = arith.constant 0 : i32
    %c0_i32_0 = arith.constant 0 : i32
    %c0_i32_1 = arith.constant 0 : i32
    return %c0_i32, %c0_i32_0 : i32, i32
  }
  func.func @transform_4(%arg0: i32, %arg1: i32) -> (i32, i32) {
    %c0_i32 = arith.constant 0 : i32
    %c0_i32_0 = arith.constant 0 : i32
    %c0_i32_1 = arith.constant 0 : i32
    return %c0_i32, %c0_i32_0 : i32, i32
  }
  func.func @transform_5(%arg0: i32, %arg1: i32) -> (i32, i32) {
    %c0_i32 = arith.constant 0 : i32
    %c0_i32_0 = arith.constant 0 : i32
    %c0_i32_1 = arith.constant 0 : i32
    return %c0_i32, %c0_i32_0 : i32, i32
  }
  func.func @transform_6(%arg0: i32, %arg1: i32) -> (i32, i32) {
    %c0_i32 = arith.constant 0 : i32
    %c0_i32_0 = arith.constant 0 : i32
    %c0_i32_1 = arith.constant 0 : i32
    return %c0_i32, %c0_i32_0 : i32, i32
  }
  func.func @transform_7(%arg0: i32, %arg1: i32) -> (i32, i32) {
    %c0_i32 = arith.constant 0 : i32
    %c0_i32_0 = arith.constant 0 : i32
    return %arg0, %c0_i32 : i32, i32
  }
}

</mosaic_0001>

<bundles_post_ra>
// kernel: tpu_custom_call.1
= control target key start
LH: loop header
LB: loop body
LE: loop exit
PB: predicated region body
PF: predicated region fallthrough
CT: control target
= control target key end

     0   :  { %s2641_s0 = inlined_call_operand.hbm [shape: bf16[32,768], index: 0, kind: input, shape index: {}]   ;;  %s2642_s1 = inlined_call_operand.hbm [shape: bf16[768,256], index: 1, kind: input, shape index: {}]   ;;  %s2643_s2 = inlined_call_operand.hbm [shape: f32[1,256], index: 2, kind: input, shape index: {}]   ;;  %s2644_s3 = inlined_call_operand.hbm [shape: bf16[256,256], index: 3, kind: input, shape index: {}]   ;;  %s2645_s4 = inlined_call_operand.vmem [shape: f32[1,256], index: 4, kind: input, shape index: {}]   ;;  %s2646_s5 = inlined_call_operand.hbm [shape: bf16[256,128], index: 5, kind: input, shape index: {}]   ;;  %s2647_s6 = inlined_call_operand.vmem [shape: f32[1,128], index: 6, kind: input, shape index: {}]   ;;  %s2648_s7 = inlined_call_operand.hbm [shape: f32[32,128], index: 7, kind: output, shape index: {}]  }
   0x1   :  { %2663 = sst [smem:[#allocation29_spill]] %s2641_s0 }
   0x2   :  { %2664 = sst [smem:[#allocation30_spill]] %s2643_s2 }
   0x3   :  { %2665 = sst [smem:[#allocation31_spill]] %s2644_s3 }
   0x4   :  { %2666 = sst [smem:[#allocation32_spill]] %s2645_s4 }
   0x5   :  { %2667 = sst [smem:[#allocation33_spill]] %s2646_s5 }
   0x6   :  { %2668 = sst [smem:[#allocation34_spill]] %s2647_s6 }
   0x7   :  { %2669 = sst [smem:[#allocation35_spill]] %s2648_s7 }
   0x8   :  { %12 = vsyncpa [#allocation4], 0 }
   0x9   :  { %14 = vsyncpa [#allocation4 + $0x1], 0 }
   0xa   :  { %15 = vsyncpa [#allocation7], 0 }
   0xb   :  { %17 = vsyncpa [#allocation7 + $0x1], 0 }
   0xc   :  { %18 = vsyncpa [#allocation10], 0 }
   0xd   :  { %19 = vsyncpa [#allocation5], 0 }
   0xe   :  { %21 = vsyncpa [#allocation5 + $0x1], 0  ;;  %s2266_s24 = smov 0   ;;  %s2268_s25 = smov 0  }
   0xf   :  { %s2270_s26 = smov 0   ;;  %s2272_s27 = smov 0  }
  0x10   :  { %s2274_s28 = smov 0   ;;  %s2276_s29 = smov 0  }
  0x11   :  { %s2278_s30 = smov 0   ;;  %s2280_s8 = smov 0  }
  0x12   :  { %s2282_s9 = smov 0   ;;  %s2284_s10 = smov 0  }
  0x13   :  { %s2286_s11 = smov 0   ;;  %s2288_s12 = smov 0  }
  0x14   :  { %s2290_s13 = smov 0   ;;  %s2292_s14 = smov 0  }
  0x15 LB: > { %2670 = sst [smem:[#allocation18_spill]] %s2161_s24  ;;  %s2333_s15 = sadd.s32 4294967295, %s2213_s14   ;;  %s2213_s14 = sphi %s2292_s14, %s27_s14   ;;  %s2209_s13 = sphi %s2290_s13, %s2722_s13   ;;  %s2205_s12 = sphi %s2288_s12, %s2721_s12   ;;  %s2201_s11 = sphi %s2286_s11, %s2720_s11   ;;  %s2197_s10 = sphi %s2284_s10, %s2719_s10   ;;  %s2193_s9 = sphi %s2282_s9, %s2707_s9   ;;  %s2189_s8 = sphi %s2280_s8, %s2718_s8   ;;  %s2185_s30 = sphi %s2278_s30, %s2717_s30   ;;  %s2181_s29 = sphi %s2276_s29, %s2716_s29   ;;  %s2177_s28 = sphi %s2274_s28, %s2715_s28   ;;  %s2173_s27 = sphi %s2272_s27, %s2714_s27   ;;  %s2169_s26 = sphi %s2270_s26, %s2705_s26   ;;  %s2165_s25 = sphi %s2268_s25, %s2713_s25   ;;  %s2161_s24 = sphi %s2266_s24, %s2712_s24  }
  0x16   : > { %2671 = sst [smem:[#allocation19_spill]] %s2169_s26  ;;  %s1291_s16 = sadd.s32 4294967294, %s2213_s14  }
  0x17   : > { %2672 = sst [smem:[#allocation20_spill]] %s2193_s9  ;;  %p61_p0 = scmp.ne.s32.totalorder %s2189_s8, %s2185_s30 }
  0x18   : > { %2673 = sst [smem:[#allocation21_spill]] %s2201_s11  ;;  %p62_p1 = scmp.eq.s32.totalorder %s2333_s15, 0 }
  0x19   : > { %2674 = sst [smem:[#allocation22_spill]] %s2209_s13  ;;  %p87_p2 = scmp.ne.s32.totalorder %s2177_s28, %s2173_s27 }
  0x1a   : > { %p2342_p3 = por %p62_p1, %p61_p0  ;;  %p215_p4 = scmp.ne.s32.totalorder %s2169_s26, %s2165_s25 }
  0x1b   : > { %p2350_p5 = por %p87_p2, %p62_p1  ;;  %p216_p6 = scmp.eq.s32.totalorder %s2333_s15, 5 }
  0x1c   : > { %p221_p7 = scmp.ne.s32.totalorder %s2165_s25, %s2161_s24  ;;  %p222_p8 = scmp.eq.s32.totalorder %s1291_s16, 5 }
  0x1d   : > { %p2357_p9 = por %p216_p6, %p215_p4  ;;  %p1292_p10 = scmp.ge.s32.totalorder %s2213_s14, 1 }
  0x1e   : > { %p2362_p11 = por %p222_p8, %p221_p7  ;;  %p229_p12 = scmp.lt.s32.totalorder %s2213_s14, 7 }
  0x1f   : > { %s2677_s20 = scalar_select %p2357_p9, 1, 0 }
  0x20   : > { %s2679_s21 = scalar_select %p2362_p11, 1, 0 }
  0x21   : > { %2678 = sst [smem:[#allocation23_spill]] %s2677_s20  ;;  %p2370_p13 = pnand %p1292_p10, %p229_p12 }
  0x22   : > { %2680 = sst [smem:[#allocation24_spill]] %s2679_s21  ;;  %s2215_s16 = smov [#allocation8]  }
  0x23   : > { %s2681_s2 = sld [smem:[#allocation30_spill]]  ;;  %p1752_p0 = pneg %p2370_p13 }
  0x24   : > { %s243_s17 = sshll.u32 %s2215_s16, 4  ;;  %s2683_s3 = sld [smem:[#allocation31_spill]]  ;;  %s244_s17 = int_to_ptr.vmem [resolvable:$true] %s243_s17 }
  0x25   : > { %p2381_p2 = pnand %p1752_p0, %p62_p1  ;;  %s2216_s22 = smov [#allocation9]  }
  0x26   : > { %s254_s23 = sshll.u32 %s2216_s22, 4  ;;  %s2654_s7 = smov 128   ;;  %s255_s23 = int_to_ptr.vmem [resolvable:$true] %s254_s23 }
  0x27   : > { %s2656_s24 = smov 8   ;;  %s2685_s5 = sld [smem:[#allocation33_spill]] }
  0x28   : > { %s2221_s11 = smov 4   ;;  %s36_s6 = sadd.s32 1, %s2205_s12 }
  0x29   : > { %s241_s27 = sshll.u32 %s2681_s2, 4  ;;  %p37_p4 = scmp.ge.s32.totalorder %s36_s6, 3  ;;  %s242_s27 = int_to_ptr.hbm [resolvable:$true] %s241_s27 }
  0x2a   : > { %s252_s21 = sshll.u32 %s2683_s3, 4  ;;  %s2220_s3 = smov 64   ;;  %s253_s21 = int_to_ptr.hbm [resolvable:$true] %s252_s21 }
  0x2b   : > { %1755 = dma.hbm_to_vmem [thread:$0]  (!%p2381_p2), %s242_s27, 32, %s244_s17, [#allocation7]  }
  0x2c   : > { %1758 = dma.hbm_to_vmem [thread:$0]  (!%p2381_p2), %s253_s21, 4096, %s255_s23, [#allocation10], %s2654_s7, %s2654_s7, %s2656_s24  }
  0x2d   : > { %s269_s22 = sshll.u32 %s2685_s5, 4  ;;  %s2219_s17 = smov [#allocation11]   ;;  %s270_s22 = int_to_ptr.hbm [resolvable:$true] %s269_s22 }
  0x2e   : > { %s271_s27 = sshll.u32 %s2219_s17, 4  ;;  %s39_s21 = sadd.s32 1, %s2209_s13  ;;  %s272_s27 = int_to_ptr.vmem [resolvable:$true] %s271_s27 }
  0x2f   : > { %1761 = dma.hbm_to_vmem [thread:$0]  (!%p2381_p2), %s270_s22, 2048, %s272_s27, [#allocation10], %s2220_s3, %s2220_s3, %s2221_s11  }
  0x30   : > { %s48_s2 = sadd.s32 1, %s2193_s9  ;;  %p55_p6 = scmp.ne.s32.totalorder %s2193_s9, %s2189_s8 }
  0x31   : > { %s2724_s6 = smov (%p37_p4, %s36_s6), 0  ;;  %s2726_s21 = smov (!%p37_p4, %s39_s21), %s2209_s13 }
  0x32   : > { %2686 = sst [smem:[#allocation25_spill]] %s2724_s6  ;;  %s2407_s23 = ssub.s32 %s2205_s12, %s2724_s6 }
  0x33   : > { %p56_p7 = scmp.eq.s32.totalorder %s2213_s14, 0  ;;  %p41_p8 = scmp.ge.s32.totalorder %s2726_s21, 2 }
  0x34   : > { %p72_p10 = scmp.eq.s32.totalorder %s2407_s23, 0  ;;  %p1776_p0 = scmp.lt.s32.totalorder %s2213_s14, 6 }
  0x35   : > { %p2413_p12 = por %p56_p7, %p55_p6  ;;  %s2728_s21 = smov (%p41_p8, %s2726_s21), 0 }
  0x36   : > { %2688 = sst [smem:[#allocation26_spill]] %s2728_s21  ;;  %s288_s11 = sand.u32 1, %s2193_s9  }
  0x37   : > { %s1299_s20 = sshll.u32 %s2205_s12, 1  ;;  %s43_s16 = ssub.s32 %s2209_s13, %s2728_s21 }
  0x38   : > { %s45_s22 = sor.u32 %s2407_s23, %s43_s16  ;;  %p203_p2 = scmp.eq.s32.totalorder %s43_s16, 0 }
  0x39   : > { %p46_p4 = scmp.eq.s32.totalorder %s45_s22, 0  ;;  %s1297_s17 = sshll.u32 %s288_s11, 4 }
  0x3a   : > { %s2689_s27 = sadd.s32 1, %s2169_s26  ;;  %s1733_s5 = smul.u32 12, %s2209_s13 }
  0x3b   : > { %s2428_s7 = scalar_select %p203_p2, %s2169_s26, %s2689_s27  }
  0x3c   : > { %s2431_s24 = scalar_select %p46_p4, %s2193_s9, %s48_s2  }
  0x3d   : > { %2690 = sst [smem:[#allocation27_spill]] %s2428_s7  ;;  %s292_s6 = scalar_lea.vmem [#allocation3], %s1297_s17 }
  0x3e   : > { %2691 = sst [smem:[#allocation28_spill]] %s2431_s24  ;;  %s303_s4 = sshll.u32 %s292_s6, 4  ;;  %s304_s4 = int_to_ptr.vmem [resolvable:$true] %s303_s4 }
  0x3f   : > { %p1763_p6 = pnand %p1776_p0, %p2413_p12  ;;  %s298_s16 = sadd.s32 %s1733_s5, %s1299_s20 }
  0x40   : > { %s1301_s22 = sshll.u32 %s298_s16, 2  ;;  %s2692_s0 = sld [smem:[#allocation29_spill]] }
  0x41   : > { %s289_s9 = scalar_lea.sflag [#allocation4], %s288_s11  ;;  %s2222_s13 = smov 384  }
  0x42   : > { %s2693_s7 = smov 8   ;;  %s2694_s17 = smov 128  }
  0x43   : > { %s74_s6 = sadd.s32 1, %s2181_s29  ;;  %p81_p8 = scmp.ne.s32.totalorder %s2181_s29, %s2177_s28 }
  0x44   : > { %s2449_s3 = scalar_select %p72_p10, %s2181_s29, %s74_s6  }
  0x45   : > { %p83_p12 = por %p81_p8, %p56_p7  ;;  %s313_s5 = sand.u32 1, %s2213_s14  }
  0x46   : > { %s300_s2 = scalar_lea.hbm %s2692_s0, %s1301_s22  ;;  %s315_s20 = sand.u32 1, %s2181_s29  }
  0x47   : > { %s301_s24 = sshll.u32 %s300_s2, 4  ;;  %s1302_s16 = sshll.u32 %s315_s20, 8  ;;  %s302_s24 = int_to_ptr.hbm [resolvable:$true] %s301_s24 }
  0x48   : > { %1765 = dma.hbm_to_vmem [thread:$0]  (!%p1763_p6), %s302_s24, 256, %s304_s4, %s289_s9, %s2222_s13, %s2694_s17, %s2693_s7  }
  0x49   : > { %s1649_s21 = sshll.u32 %s2205_s12, 8  ;;  %s317_s0 = scalar_lea.vmem [#allocation6], %s1302_s16 }
  0x4a   : > { %s323_s11 = scalar_lea.hbm %s2642_s1, %s1649_s21  ;;  %s326_s26 = sshll.u32 %s317_s0, 4  ;;  %s327_s26 = int_to_ptr.vmem [resolvable:$true] %s326_s26 }
  0x4b   : > { %s324_s2 = sshll.u32 %s323_s11, 4  ;;  %p1766_p2 = pnand %p1776_p0, %p83_p12  ;;  %s325_s2 = int_to_ptr.hbm [resolvable:$true] %s324_s2 }
  0x4c   : > { %s314_s4 = scalar_lea.sflag [#allocation7], %s313_s5  ;;  %338 = sbr.rel (%p2370_p13) target bundleno = 626 (0x272), region = 48 }
  0x4d   : > { %1768 = dma.hbm_to_vmem [thread:$0]  (!%p1766_p2), %s325_s2, 4096, %s327_s26, %s314_s4, %s2694_s17, %s2694_s17, %s2693_s7  }
  0x4e   : > { %s340_s9 = sand.u32 (!%p2370_p13), 1, %s2189_s8  }
  0x4f   : > { %s1307_s13 = sshll.u32 (!%p2370_p13), %s340_s9, 4  ;;  %s341_s24 = scalar_lea.sflag (!%p2370_p13), [#allocation4], %s340_s9 }
  0x50   : > { %s2467_s23 = scalar_lea.vmem (!%p2370_p13), [#allocation3], %s1307_s13 }
  0x51   : > { %2140 = dma.done.wait (%p2342_p3), %s341_s24, 256  }
  0x52   : > { %2142 = vsyncadd (%p2342_p3), %s341_s24, 4294967040  ;;  %s350_s0 = sand.u32 1, %s2333_s15   ;;  %s352_s26 = sand.u32 1, %s2177_s28  }
  0x53   : > { %s1308_s7 = sshll.u32 %s352_s26, 8  ;;  %s351_s30 = scalar_lea.sflag [#allocation7], %s350_s0 }
  0x54   : > { %s2475_s17 = scalar_lea.vmem [#allocation6], %s1308_s7 }
  0x55   : > { %2144 = dma.done.wait (%p2350_p5), %s351_s30, 4096  }
  0x56   : > { %2146 = vsyncadd (%p2350_p5), %s351_s30, 4294963200 }
  0x57   : > { %2148 = dma.done.wait (%p62_p1), [#allocation7], 32  }
  0x58   : > { %2150 = vsyncadd (%p62_p1), [#allocation7], 4294967264 }
  0x59   : > { %2152 = dma.done.wait (%p62_p1), [#allocation10], 6144  }
  0x5a   : > { %2154 = vsyncadd (%p62_p1), [#allocation10], 4294961152  ;;  %s403_s18 = sand.u32 1, %s2165_s25   ;;  %p1313_p3 = scmp.ne.s32.totalorder %s2197_s10, 0 }
  0x5b   : > { %s1312_s6 = sshll.u32 %s403_s18, 4 }
  0x5c   : > { %s2492_s5 = scalar_lea.vmem [#allocation12], %s1312_s6  ;;  %413 = sbr.rel (%p1313_p3) target bundleno = 102 (0x66), region = 72 }
  0x61   : > { %v2223_v0 = vmov 0.0  }
  0x62   : > { %414 = vst [vmem:[#allocation2 + $0x10] sm:$0xff] %v2223_v0 }
  0x63   : > { %415 = vst [vmem:[#allocation2] sm:$0xff] %v2223_v0 }
  0x64   : > { %416 = vst [vmem:[#allocation2 + $0x18] sm:$0xff] %v2223_v0 }
  0x65   : > { %417 = vst [vmem:[#allocation2 + $0x8] sm:$0xff] %v2223_v0 }
  0x66 PF: > { %v1380_v1 = vld [vmem:[%s2475_s17 + $0x70] sm:$0xf]  ;;  %v1667_v2 = vld [vmem:[%s2475_s17 + $0x74] sm:$0xf0]  ;;  %v1666_v6 = vld [vmem:[%s2475_s17 + $0x74] sm:$0xf] }
  0x67   : > { %v1444_v3 = vld [vmem:[%s2475_s17 + $0xf0] sm:$0xf]  ;;  %v1381_v4 = vor.u32 %v1667_v2, %v1380_v1  ;;  %v1683_v5 = vld [vmem:[%s2475_s17 + $0xf4] sm:$0xf0]  ;;  %v1382_v7 = vld [vmem:[%s2475_s17 + $0x78] sm:$0xf0] }
  0x68   : > { %v1445_v8 = vor.u32 %v1683_v5, %v1444_v3  ;;  %v1385_v9 = vor.u32 %v1666_v6, %v1382_v7  ;;  %v1682_v10 = vld [vmem:[%s2475_s17 + $0xf4] sm:$0xf]  ;;  %v1446_v11 = vld [vmem:[%s2475_s17 + $0xf8] sm:$0xf0]  ;;  %v1372_v12 = vld [vmem:[%s2475_s17 + $0x60] sm:$0xf] }
  0x69   : > { %626 = vmatpush.bf16.msra.mxu0 %v1381_v4  ;;  %v1449_v13 = vor.u32 %v1682_v10, %v1446_v11  ;;  %v1665_v14 = vld [vmem:[%s2475_s17 + $0x64] sm:$0xf0]  ;;  %v1436_v15 = vld [vmem:[%s2475_s17 + $0xe0] sm:$0xf]  ;;  %v1664_v19 = vld [vmem:[%s2475_s17 + $0x64] sm:$0xf] }
  0x6a   : > { %v1681_v16 = vld [vmem:[%s2475_s17 + $0xe4] sm:$0xf0]  ;;  %640 = vmatpush.bf16.msra.mxu1 %v1445_v8  ;;  %654 = vmatpush.bf16.msra.mxu2 %v1385_v9  ;;  %v1373_v17 = vor.u32 %v1665_v14, %v1372_v12  ;;  %v1374_v20 = vld [vmem:[%s2475_s17 + $0x68] sm:$0xf0]  ;;  %v1680_v21 = vld [vmem:[%s2475_s17 + $0xe4] sm:$0xf] }
  0x6b   : > { %v1437_v18 = vor.u32 %v1681_v16, %v1436_v15  ;;  %668 = vmatpush.bf16.msra.mxu3 %v1449_v13  ;;  %v1377_v22 = vor.u32 %v1664_v19, %v1374_v20  ;;  %v1438_v23 = vld [vmem:[%s2475_s17 + $0xe8] sm:$0xf0]  ;;  %v1364_v24 = vld [vmem:[%s2475_s17 + $0x50] sm:$0xf]  ;;  %v1663_v25 = vld [vmem:[%s2475_s17 + $0x54] sm:$0xf0] }
  0x6c   : > { %v1441_v26 = vor.u32 %v1680_v21, %v1438_v23  ;;  %v1428_v27 = vld [vmem:[%s2475_s17 + $0xd0] sm:$0xf]  ;;  %v1679_v28 = vld [vmem:[%s2475_s17 + $0xd4] sm:$0xf0]  ;;  %v1662_v29 = vld [vmem:[%s2475_s17 + $0x54] sm:$0xf]  ;;  %v1365_v30 = vor.u32 %v1663_v25, %v1364_v24 }
  0x6d   : > { %627 = vmatpush.bf16.msra.mxu0 %v1373_v17  ;;  %v1366_v31 = vld [vmem:[%s2475_s17 + $0x58] sm:$0xf0]  ;;  %v1678_v32 = vld [vmem:[%s2475_s17 + $0xd4] sm:$0xf]  ;;  %v1429_v34 = vor.u32 %v1679_v28, %v1428_v27  ;;  %v1356_v36 = vld [vmem:[%s2475_s17 + $0x40] sm:$0xf] }
  0x6e   : > { %v1430_v33 = vld [vmem:[%s2475_s17 + $0xd8] sm:$0xf0]  ;;  %641 = vmatpush.bf16.msra.mxu1 %v1437_v18  ;;  %655 = vmatpush.bf16.msra.mxu2 %v1377_v22  ;;  %v1369_v35 = vor.u32 %v1662_v29, %v1366_v31  ;;  %v1661_v37 = vld [vmem:[%s2475_s17 + $0x44] sm:$0xf0]  ;;  %v1420_v38 = vld [vmem:[%s2475_s17 + $0xc0] sm:$0xf] }
  0x6f   : > { %669 = vmatpush.bf16.msra.mxu3 %v1441_v26  ;;  %v1433_v39 = vor.u32 %v1678_v32, %v1430_v33  ;;  %v1677_v40 = vld [vmem:[%s2475_s17 + $0xc4] sm:$0xf0]  ;;  %v1660_v41 = vld [vmem:[%s2475_s17 + $0x44] sm:$0xf]  ;;  %v1358_v42 = vld [vmem:[%s2475_s17 + $0x48] sm:$0xf0]  ;;  %v1357_v45 = vor.u32 %v1661_v37, %v1356_v36 }
  0x70   : > { %v1676_v43 = vld [vmem:[%s2475_s17 + $0xc4] sm:$0xf]  ;;  %v1422_v44 = vld [vmem:[%s2475_s17 + $0xc8] sm:$0xf0]  ;;  %v1421_v46 = vor.u32 %v1677_v40, %v1420_v38  ;;  %v1361_v47 = vor.u32 %v1660_v41, %v1358_v42  ;;  %v1348_v48 = vld [vmem:[%s2475_s17 + $0x30] sm:$0xf] }
  0x71   : > { %628 = vmatpush.bf16.msra.mxu0 %v1365_v30  ;;  %v1659_v49 = vld [vmem:[%s2475_s17 + $0x34] sm:$0xf0]  ;;  %v1412_v50 = vld [vmem:[%s2475_s17 + $0xb0] sm:$0xf]  ;;  %v1425_v51 = vor.u32 %v1676_v43, %v1422_v44  ;;  %v1658_v53 = vld [vmem:[%s2475_s17 + $0x34] sm:$0xf] }
  0x72   : > { %642 = vmatpush.bf16.msra.mxu1 %v1429_v34  ;;  %656 = vmatpush.bf16.msra.mxu2 %v1369_v35  ;;  %v1675_v52 = vld [vmem:[%s2475_s17 + $0xb4] sm:$0xf0]  ;;  %v1350_v54 = vld [vmem:[%s2475_s17 + $0x38] sm:$0xf0]  ;;  %v1674_v55 = vld [vmem:[%s2475_s17 + $0xb4] sm:$0xf]  ;;  %v1349_v57 = vor.u32 %v1659_v49, %v1348_v48 }
  0x73   : > { %670 = vmatpush.bf16.msra.mxu3 %v1433_v39  ;;  %v1414_v56 = vld [vmem:[%s2475_s17 + $0xb8] sm:$0xf0]  ;;  %v1413_v58 = vor.u32 %v1675_v52, %v1412_v50  ;;  %v1353_v59 = vor.u32 %v1658_v53, %v1350_v54  ;;  %v1340_v60 = vld [vmem:[%s2475_s17 + $0x20] sm:$0xf]  ;;  %v1657_v61 = vld [vmem:[%s2475_s17 + $0x24] sm:$0xf0] }
  0x74   : > { %v1404_v62 = vld [vmem:[%s2475_s17 + $0xa0] sm:$0xf]  ;;  %v1417_v63 = vor.u32 %v1674_v55, %v1414_v56  ;;  %v1673_v0 = vld [vmem:[%s2475_s17 + $0xa4] sm:$0xf0]  ;;  %v1656_v1 = vld [vmem:[%s2475_s17 + $0x24] sm:$0xf]  ;;  %v1341_v5 = vor.u32 %v1657_v61, %v1340_v60 }
  0x75   : > { %629 = vmatpush.bf16.msra.mxu0 %v1357_v45  ;;  %v1342_v2 = vld [vmem:[%s2475_s17 + $0x28] sm:$0xf0]  ;;  %v1672_v3 = vld [vmem:[%s2475_s17 + $0xa4] sm:$0xf]  ;;  %v1405_v6 = vor.u32 %v1673_v0, %v1404_v62  ;;  %v1332_v8 = vld [vmem:[%s2475_s17 + $0x10] sm:$0xf] }
  0x76   : > { %643 = vmatpush.bf16.msra.mxu1 %v1421_v46  ;;  %657 = vmatpush.bf16.msra.mxu2 %v1361_v47  ;;  %v1406_v4 = vld [vmem:[%s2475_s17 + $0xa8] sm:$0xf0]  ;;  %v1345_v7 = vor.u32 %v1656_v1, %v1342_v2  ;;  %v1655_v9 = vld [vmem:[%s2475_s17 + $0x14] sm:$0xf0]  ;;  %v1396_v10 = vld [vmem:[%s2475_s17 + $0x90] sm:$0xf] }
  0x77   : > { %671 = vmatpush.bf16.msra.mxu3 %v1425_v51  ;;  %v1409_v11 = vor.u32 %v1672_v3, %v1406_v4  ;;  %v1671_v12 = vld [vmem:[%s2475_s17 + $0x94] sm:$0xf0]  ;;  %v1654_v13 = vld [vmem:[%s2475_s17 + $0x14] sm:$0xf]  ;;  %v1334_v14 = vld [vmem:[%s2475_s17 + $0x18] sm:$0xf0]  ;;  %v1333_v17 = vor.u32 %v1655_v9, %v1332_v8 }
  0x78   : > { %v1670_v15 = vld [vmem:[%s2475_s17 + $0x94] sm:$0xf]  ;;  %v1398_v16 = vld [vmem:[%s2475_s17 + $0x98] sm:$0xf0]  ;;  %v1397_v18 = vor.u32 %v1671_v12, %v1396_v10  ;;  %v1337_v19 = vor.u32 %v1654_v13, %v1334_v14  ;;  %v1324_v20 = vld [vmem:[%s2475_s17] sm:$0xf] }
  0x79   : > { %630 = vmatpush.bf16.msra.mxu0 %v1349_v57  ;;  %v1653_v21 = vld [vmem:[%s2475_s17 + $0x4] sm:$0xf0]  ;;  %v1388_v22 = vld [vmem:[%s2475_s17 + $0x80] sm:$0xf]  ;;  %v1401_v23 = vor.u32 %v1670_v15, %v1398_v16  ;;  %v1652_v25 = vld [vmem:[%s2475_s17 + $0x4] sm:$0xf] }
  0x7a   : > { %644 = vmatpush.bf16.msra.mxu1 %v1413_v58  ;;  %658 = vmatpush.bf16.msra.mxu2 %v1353_v59  ;;  %v1669_v24 = vld [vmem:[%s2475_s17 + $0x84] sm:$0xf0]  ;;  %v1326_v26 = vld [vmem:[%s2475_s17 + $0x8] sm:$0xf0]  ;;  %v1668_v27 = vld [vmem:[%s2475_s17 + $0x84] sm:$0xf]  ;;  %v1325_v29 = vor.u32 %v1653_v21, %v1324_v20 }
  0x7b   : > { %672 = vmatpush.bf16.msra.mxu3 %v1417_v63  ;;  %v1390_v28 = vld [vmem:[%s2475_s17 + $0x88] sm:$0xf0]  ;;  %v1316_v30 = vld [vmem:[%s2467_s23] sm:$0xf]  ;;  %v1651_v31 = vld [vmem:[%s2467_s23 + $0x4] sm:$0xf0]  ;;  %v1389_v32 = vor.u32 %v1669_v24, %v1388_v22  ;;  %v1329_v33 = vor.u32 %v1652_v25, %v1326_v26 }
  0x7c   : > { %v1650_v34 = vld [vmem:[%s2467_s23 + $0x4] sm:$0xf]  ;;  %v1318_v35 = vld [vmem:[%s2467_s23 + $0x8] sm:$0xf0]  ;;  %v1393_v36 = vor.u32 %v1668_v27, %v1390_v28  ;;  %v1317_v37 = vor.u32 %v1651_v31, %v1316_v30  ;;  %p1450_p1 = scmp.ne.s32.totalorder %s2197_s10, 2 }
  0x7d   : > { %631 = vmatpush.bf16.msra.mxu0 %v1341_v5  ;;  %v1321_v38 = vor.u32 %v1650_v34, %v1318_v35  ;;  %v418_v40 = vld [vmem:[#allocation2 + $0x10] sm:$0xff]  ;;  %v419_v45 = vld [vmem:[#allocation2] sm:$0xff]  ;;  %v420_v49 = vld [vmem:[#allocation2 + $0x18] sm:$0xff]  ;;  %s2695_s19 = sld [smem:[#allocation32_spill]] (!%p1450_p1) }
  0x7e   : > { %645 = vmatpush.bf16.msra.mxu1 %v1405_v6  ;;  %659 = vmatpush.bf16.msra.mxu2 %v1345_v7  ;;  %v421_v55 = vld [vmem:[#allocation2 + $0x8] sm:$0xff]  ;;  %s2696_s21 = sld [smem:[#allocation34_spill]] (!%p1450_p1) }
  0x7f   : > { %673 = vmatpush.bf16.msra.mxu3 %v1409_v11 }
  0x81   : > { %632 = vmatpush.bf16.msra.mxu0 %v1333_v17 }
  0x82   : > { %646 = vmatpush.bf16.msra.mxu1 %v1397_v18  ;;  %660 = vmatpush.bf16.msra.mxu2 %v1337_v19 }
  0x83   : > { %674 = vmatpush.bf16.msra.mxu3 %v1401_v23 }
  0x85   : > { %633 = vmatpush.bf16.msra.mxu0 %v1325_v29 }
  0x86   : > { %647 = vmatpush.bf16.msra.mxu1 %v1389_v32  ;;  %661 = vmatpush.bf16.msra.mxu2 %v1329_v33 }
  0x87   : > { %675 = vmatpush.bf16.msra.mxu3 %v1393_v36 }
  0x88   : > { %634 = vmatmul.bf16.vlgmr.msra.gmra.mxu0 %v1317_v37 }
  0x89   : > { %648 = vmatmul.bf16.vlgmr.msra.gmra.mxu1 %v1321_v38  ;;  %662 = vmatmul.bf16.vlgmr.msra.gmra.mxu2 %v1317_v37 }
  0x8a   : > { %676 = vmatmul.bf16.vlgmr.msra.gmra.mxu3 %v1321_v38 }
 0x105   : > { %v635_v39 = vpop.f32.mrf.mxu0 }
 0x106   : > { %v649_v41 = vpop.f32.mrf.mxu1 }
 0x107   : > { %v650_v42 = vadd.f32 %v649_v41, %v635_v39 }
 0x109   : > { %v682_v43 = vadd.f32 %v650_v42, %v418_v40 }
 0x10b   : > { %686 = vst [vmem:[#allocation2 + $0x10] sm:$0xff] %v682_v43 }
 0x10c   : > { %v663_v44 = vpop.f32.mrf.mxu2 }
 0x10d   : > { %v677_v46 = vpop.f32.mrf.mxu3  ;;  %v637_v47 = vpop.f32.mrf.mxu0 }
 0x10e   : > { %v678_v48 = vadd.f32 %v677_v46, %v663_v44  ;;  %v651_v50 = vpop.f32.mrf.mxu1 }
 0x10f   : > { %v652_v51 = vadd.f32 %v651_v50, %v637_v47 }
 0x110   : > { %v683_v52 = vadd.f32 %v678_v48, %v419_v45 }
 0x111   : > { %v684_v53 = vadd.f32 %v652_v51, %v420_v49 }
 0x112   : > { %687 = vst [vmem:[#allocation2] sm:$0xff] %v683_v52 }
 0x113   : > { %688 = vst [vmem:[#allocation2 + $0x18] sm:$0xff] %v684_v53 }
 0x114   : > { %v665_v54 = vpop.f32.mrf.mxu2 }
 0x115   : > { %v679_v56 = vpop.f32.mrf.mxu3 }
 0x116   : > { %v680_v57 = vadd.f32 %v679_v56, %v665_v54  ;;  %693 = sbr.rel (%p1450_p1) target bundleno = 604 (0x25c), region = 76 }
 0x118   : > { %v685_v58 = vadd.f32 %v680_v57, %v421_v55 }
 0x11a   : > { %689 = vst [vmem:[#allocation2 + $0x8] sm:$0xff] %v685_v58 }
 0x11b   : > { %v1509_v59 = vld [vmem:[#allocation9 + $0x70] sm:$0xf]  ;;  %v1699_v60 = vld [vmem:[#allocation9 + $0x74] sm:$0xf0]  ;;  %v1698_v0 = vld [vmem:[#allocation9 + $0x74] sm:$0xf] }
 0x11c   : > { %v1573_v61 = vld [vmem:[#allocation9 + $0xf0] sm:$0xf]  ;;  %v1510_v62 = vor.u32 %v1699_v60, %v1509_v59  ;;  %v1715_v63 = vld [vmem:[#allocation9 + $0xf4] sm:$0xf0]  ;;  %v1511_v1 = vld [vmem:[#allocation9 + $0x78] sm:$0xf0] }
 0x11d   : > { %v1574_v2 = vor.u32 %v1715_v63, %v1573_v61  ;;  %v1514_v3 = vor.u32 %v1698_v0, %v1511_v1  ;;  %v1714_v4 = vld [vmem:[#allocation9 + $0xf4] sm:$0xf]  ;;  %v1575_v5 = vld [vmem:[#allocation9 + $0xf8] sm:$0xf0]  ;;  %v1501_v6 = vld [vmem:[#allocation9 + $0x60] sm:$0xf] }
 0x11e   : > { %912 = vmatpush.bf16.msra.mxu0 %v1510_v62  ;;  %v1578_v7 = vor.u32 %v1714_v4, %v1575_v5  ;;  %v1697_v8 = vld [vmem:[#allocation9 + $0x64] sm:$0xf0]  ;;  %v1565_v9 = vld [vmem:[#allocation9 + $0xe0] sm:$0xf]  ;;  %v1696_v13 = vld [vmem:[#allocation9 + $0x64] sm:$0xf] }
 0x11f   : > { %v1713_v10 = vld [vmem:[#allocation9 + $0xe4] sm:$0xf0]  ;;  %926 = vmatpush.bf16.msra.mxu1 %v1574_v2  ;;  %940 = vmatpush.bf16.msra.mxu2 %v1514_v3  ;;  %v1502_v11 = vor.u32 %v1697_v8, %v1501_v6  ;;  %v1503_v14 = vld [vmem:[#allocation9 + $0x68] sm:$0xf0]  ;;  %v1712_v15 = vld [vmem:[#allocation9 + $0xe4] sm:$0xf] }
 0x120   : > { %v1566_v12 = vor.u32 %v1713_v10, %v1565_v9  ;;  %954 = vmatpush.bf16.msra.mxu3 %v1578_v7  ;;  %v1506_v16 = vor.u32 %v1696_v13, %v1503_v14  ;;  %v1567_v17 = vld [vmem:[#allocation9 + $0xe8] sm:$0xf0]  ;;  %v1493_v18 = vld [vmem:[#allocation9 + $0x50] sm:$0xf]  ;;  %v1695_v19 = vld [vmem:[#allocation9 + $0x54] sm:$0xf0] }
 0x121   : > { %v1570_v20 = vor.u32 %v1712_v15, %v1567_v17  ;;  %v1557_v21 = vld [vmem:[#allocation9 + $0xd0] sm:$0xf]  ;;  %v1711_v22 = vld [vmem:[#allocation9 + $0xd4] sm:$0xf0]  ;;  %v1694_v23 = vld [vmem:[#allocation9 + $0x54] sm:$0xf]  ;;  %v1494_v24 = vor.u32 %v1695_v19, %v1493_v18 }
 0x122   : > { %913 = vmatpush.bf16.msra.mxu0 %v1502_v11  ;;  %v1495_v25 = vld [vmem:[#allocation9 + $0x58] sm:$0xf0]  ;;  %v1710_v26 = vld [vmem:[#allocation9 + $0xd4] sm:$0xf]  ;;  %v1558_v28 = vor.u32 %v1711_v22, %v1557_v21  ;;  %v1485_v30 = vld [vmem:[#allocation9 + $0x40] sm:$0xf] }
 0x123   : > { %v1559_v27 = vld [vmem:[#allocation9 + $0xd8] sm:$0xf0]  ;;  %927 = vmatpush.bf16.msra.mxu1 %v1566_v12  ;;  %941 = vmatpush.bf16.msra.mxu2 %v1506_v16  ;;  %v1498_v29 = vor.u32 %v1694_v23, %v1495_v25  ;;  %v1693_v31 = vld [vmem:[#allocation9 + $0x44] sm:$0xf0]  ;;  %v1549_v32 = vld [vmem:[#allocation9 + $0xc0] sm:$0xf] }
 0x124   : > { %955 = vmatpush.bf16.msra.mxu3 %v1570_v20  ;;  %v1562_v33 = vor.u32 %v1710_v26, %v1559_v27  ;;  %v1709_v34 = vld [vmem:[#allocation9 + $0xc4] sm:$0xf0]  ;;  %v1692_v35 = vld [vmem:[#allocation9 + $0x44] sm:$0xf]  ;;  %v1487_v36 = vld [vmem:[#allocation9 + $0x48] sm:$0xf0]  ;;  %v1486_v39 = vor.u32 %v1693_v31, %v1485_v30 }
 0x125   : > { %v1708_v37 = vld [vmem:[#allocation9 + $0xc4] sm:$0xf]  ;;  %v1551_v38 = vld [vmem:[#allocation9 + $0xc8] sm:$0xf0]  ;;  %v1550_v40 = vor.u32 %v1709_v34, %v1549_v32  ;;  %v1490_v41 = vor.u32 %v1692_v35, %v1487_v36  ;;  %v1477_v42 = vld [vmem:[#allocation9 + $0x30] sm:$0xf] }
 0x126   : > { %914 = vmatpush.bf16.msra.mxu0 %v1494_v24  ;;  %v1691_v43 = vld [vmem:[#allocation9 + $0x34] sm:$0xf0]  ;;  %v1541_v44 = vld [vmem:[#allocation9 + $0xb0] sm:$0xf]  ;;  %v1554_v45 = vor.u32 %v1708_v37, %v1551_v38  ;;  %v1690_v47 = vld [vmem:[#allocation9 + $0x34] sm:$0xf] }
 0x127   : > { %928 = vmatpush.bf16.msra.mxu1 %v1558_v28  ;;  %942 = vmatpush.bf16.msra.mxu2 %v1498_v29  ;;  %v1707_v46 = vld [vmem:[#allocation9 + $0xb4] sm:$0xf0]  ;;  %v1479_v48 = vld [vmem:[#allocation9 + $0x38] sm:$0xf0]  ;;  %v1706_v49 = vld [vmem:[#allocation9 + $0xb4] sm:$0xf]  ;;  %v1478_v51 = vor.u32 %v1691_v43, %v1477_v42 }
 0x128   : > { %956 = vmatpush.bf16.msra.mxu3 %v1562_v33  ;;  %v1543_v50 = vld [vmem:[#allocation9 + $0xb8] sm:$0xf0]  ;;  %v1542_v52 = vor.u32 %v1707_v46, %v1541_v44  ;;  %v1482_v53 = vor.u32 %v1690_v47, %v1479_v48  ;;  %v1469_v54 = vld [vmem:[#allocation9 + $0x20] sm:$0xf]  ;;  %v1689_v55 = vld [vmem:[#allocation9 + $0x24] sm:$0xf0] }
 0x129   : > { %v1533_v56 = vld [vmem:[#allocation9 + $0xa0] sm:$0xf]  ;;  %v1546_v57 = vor.u32 %v1706_v49, %v1543_v50  ;;  %v1705_v58 = vld [vmem:[#allocation9 + $0xa4] sm:$0xf0]  ;;  %v1688_v59 = vld [vmem:[#allocation9 + $0x24] sm:$0xf]  ;;  %v1470_v0 = vor.u32 %v1689_v55, %v1469_v54 }
 0x12a   : > { %915 = vmatpush.bf16.msra.mxu0 %v1486_v39  ;;  %v1471_v60 = vld [vmem:[#allocation9 + $0x28] sm:$0xf0]  ;;  %v1704_v61 = vld [vmem:[#allocation9 + $0xa4] sm:$0xf]  ;;  %v1461_v63 = vld [vmem:[#allocation9 + $0x10] sm:$0xf]  ;;  %v1534_v4 = vor.u32 %v1705_v58, %v1533_v56 }
 0x12b   : > { %929 = vmatpush.bf16.msra.mxu1 %v1550_v40  ;;  %943 = vmatpush.bf16.msra.mxu2 %v1490_v41  ;;  %v1535_v62 = vld [vmem:[#allocation9 + $0xa8] sm:$0xf0]  ;;  %v1687_v1 = vld [vmem:[#allocation9 + $0x14] sm:$0xf0]  ;;  %v1525_v2 = vld [vmem:[#allocation9 + $0x90] sm:$0xf]  ;;  %v1474_v5 = vor.u32 %v1688_v59, %v1471_v60 }
 0x12c   : > { %957 = vmatpush.bf16.msra.mxu3 %v1554_v45  ;;  %v1703_v3 = vld [vmem:[#allocation9 + $0x94] sm:$0xf0]  ;;  %v1686_v6 = vld [vmem:[#allocation9 + $0x14] sm:$0xf]  ;;  %v1463_v7 = vld [vmem:[#allocation9 + $0x18] sm:$0xf0]  ;;  %v1538_v9 = vor.u32 %v1704_v61, %v1535_v62  ;;  %v1462_v16 = vor.u32 %v1687_v1, %v1461_v63 }
 0x12d   : > { %v1702_v8 = vld [vmem:[#allocation9 + $0x94] sm:$0xf]  ;;  %v1527_v10 = vld [vmem:[#allocation9 + $0x98] sm:$0xf0]  ;;  %v697_v15 = vld [vmem:[#allocation2 + $0x8] sm:$0xff]  ;;  %v1526_v21 = vor.u32 %v1703_v3, %v1525_v2  ;;  %v1466_v22 = vor.u32 %v1686_v6, %v1463_v7 }
 0x12e   : > { %916 = vmatpush.bf16.msra.mxu0 %v1478_v51  ;;  %v694_v11 = vld [vmem:[#allocation2 + $0x10] sm:$0xff]  ;;  %v696_v12 = vld [vmem:[#allocation2 + $0x18] sm:$0xff]  ;;  %v698_v13 = vld [vmem:[#allocation8] sm:$0x3]  ;;  %v1530_v23 = vor.u32 %v1702_v8, %v1527_v10 }
 0x12f   : > { %930 = vmatpush.bf16.msra.mxu1 %v1542_v52  ;;  %944 = vmatpush.bf16.msra.mxu2 %v1482_v53  ;;  %v695_v14 = vld [vmem:[#allocation2] sm:$0xff]  ;;  %v1685_v18 = vld [vmem:[#allocation9 + $0x4] sm:$0xf0]  ;;  %v700_v19 = vperm.slane %v698_v13, 0  ;;  %v701_v20 = vperm.slane %v698_v13, 1  ;;  %v1722_v46 = vld [vmem:[#allocation11 + $0x30] sm:$0xff] }
 0x130   : > { %958 = vmatpush.bf16.msra.mxu3 %v1546_v57  ;;  %v1453_v17 = vld [vmem:[#allocation9] sm:$0xf]  ;;  %v1701_v25 = vld [vmem:[#allocation9 + $0x84] sm:$0xf0]  ;;  %v1684_v26 = vld [vmem:[#allocation9 + $0x4] sm:$0xf] }
 0x131   : > { %v1517_v24 = vld [vmem:[#allocation9 + $0x80] sm:$0xf]  ;;  %v1455_v27 = vld [vmem:[#allocation9 + $0x8] sm:$0xf0]  ;;  %v704_v28 = vadd.f32 %v700_v19, %v694_v11  ;;  %v706_v29 = vadd.f32 %v700_v19, %v696_v12  ;;  %v705_v30 = vadd.f32 %v701_v20, %v695_v14  ;;  %v707_v31 = vadd.f32 %v701_v20, %v697_v15  ;;  %v1700_v33 = vld [vmem:[#allocation9 + $0x84] sm:$0xf] }
 0x132   : > { %917 = vmatpush.bf16.msra.mxu0 %v1470_v0  ;;  %v1454_v32 = vor.u32 %v1685_v18, %v1453_v17  ;;  %v1519_v34 = vld [vmem:[#allocation9 + $0x88] sm:$0xf0]  ;;  %v1518_v39 = vor.u32 %v1701_v25, %v1517_v24  ;;  %v1458_v40 = vor.u32 %v1684_v26, %v1455_v27  ;;  %v1723_v42 = vld [vmem:[#allocation11 + $0x38] sm:$0xff]  ;;  %v1730_v47 = vld [vmem:[#allocation11 + $0x70] sm:$0xff] }
 0x133   : > { %931 = vmatpush.bf16.msra.mxu1 %v1534_v4  ;;  %945 = vmatpush.bf16.msra.mxu2 %v1474_v5  ;;  %v708_v35 = vmax.f32 %v704_v28, 0.0  ;;  %v710_v36 = vmax.f32 %v706_v29, 0.0  ;;  %v709_v37 = vmax.f32 %v705_v30, 0.0  ;;  %v711_v38 = vmax.f32 %v707_v31, 0.0  ;;  %v1731_v44 = vld [vmem:[#allocation11 + $0x78] sm:$0xff]  ;;  %v1721_v48 = vld [vmem:[#allocation11 + $0x28] sm:$0xff] }
 0x134   : > { %959 = vmatpush.bf16.msra.mxu3 %v1538_v9  ;;  %v1522_v41 = vor.u32 %v1700_v33, %v1519_v34  ;;  %v1720_v49 = vld [vmem:[#allocation11 + $0x20] sm:$0xff]  ;;  %v1729_v50 = vld [vmem:[#allocation11 + $0x68] sm:$0xff]  ;;  %v1719_v51 = vld [vmem:[#allocation11 + $0x18] sm:$0xff] }
 0x135   : > { %v712_v43 = vpack.c.bf16 %v710_v36, %v708_v35  ;;  %v713_v45 = vpack.c.bf16 %v711_v38, %v709_v37  ;;  %v1728_v52 = vld [vmem:[#allocation11 + $0x60] sm:$0xff]  ;;  %v1718_v53 = vld [vmem:[#allocation11 + $0x10] sm:$0xff]  ;;  %v1727_v54 = vld [vmem:[#allocation11 + $0x58] sm:$0xff] }
 0x136   : > { %918 = vmatpush.bf16.msra.mxu0 %v1462_v16  ;;  %v1717_v55 = vld [vmem:[#allocation11 + $0x8] sm:$0xff]  ;;  %v1726_v56 = vld [vmem:[#allocation11 + $0x50] sm:$0xff]  ;;  %v1716_v57 = vld [vmem:[#allocation11] sm:$0xff] }
 0x137   : > { %932 = vmatpush.bf16.msra.mxu1 %v1526_v21  ;;  %946 = vmatpush.bf16.msra.mxu2 %v1466_v22  ;;  %v1725_v58 = vld [vmem:[#allocation11 + $0x48] sm:$0xff]  ;;  %v1724_v59 = vld [vmem:[#allocation11 + $0x40] sm:$0xff]  ;;  %v746_v60 = vld [vmem:[%s2695_s19] sm:$0x3] }
 0x138   : > { %960 = vmatpush.bf16.msra.mxu3 %v1530_v23  ;;  %v748_v62 = vperm.slane %v746_v60, 0  ;;  %v749_v2 = vperm.slane %v746_v60, 1  ;;  %v1904_v22 = vld [vmem:[%s2696_s21] ss:$0 sm:$0xff] }
 0x13a   : > { %919 = vmatpush.bf16.msra.mxu0 %v1454_v32 }
 0x13b   : > { %933 = vmatpush.bf16.msra.mxu1 %v1518_v39  ;;  %947 = vmatpush.bf16.msra.mxu2 %v1458_v40 }
 0x13c   : > { %961 = vmatpush.bf16.msra.mxu3 %v1522_v41 }
 0x13d   : > { %920 = vmatmul.bf16.vlgmr.msra.gmra.mxu0 %v712_v43 }
 0x13e   : > { %1106 = vmatpush.bf16.msrb.mxu0 %v1723_v42  ;;  %934 = vmatmul.bf16.vlgmr.msra.gmra.mxu1 %v713_v45 }
 0x13f   : > { %1120 = vmatpush.bf16.msrb.mxu1 %v1731_v44  ;;  %948 = vmatmul.bf16.vlgmr.msra.gmra.mxu2 %v712_v43 }
 0x140   : > { %962 = vmatmul.bf16.vlgmr.msra.gmra.mxu3 %v713_v45 }
 0x142   : > { %1107 = vmatpush.bf16.msrb.mxu0 %v1722_v46 }
 0x143   : > { %1121 = vmatpush.bf16.msrb.mxu1 %v1730_v47 }
 0x146   : > { %1108 = vmatpush.bf16.msrb.mxu0 %v1721_v48 }
 0x147   : > { %1122 = vmatpush.bf16.msrb.mxu1 %v1729_v50 }
 0x14a   : > { %1109 = vmatpush.bf16.msrb.mxu0 %v1720_v49 }
 0x14b   : > { %1123 = vmatpush.bf16.msrb.mxu1 %v1728_v52 }
 0x14e   : > { %1110 = vmatpush.bf16.msrb.mxu0 %v1719_v51 }
 0x14f   : > { %1124 = vmatpush.bf16.msrb.mxu1 %v1727_v54 }
 0x152   : > { %1111 = vmatpush.bf16.msrb.mxu0 %v1718_v53 }
 0x153   : > { %1125 = vmatpush.bf16.msrb.mxu1 %v1726_v56 }
 0x156   : > { %1112 = vmatpush.bf16.msrb.mxu0 %v1717_v55 }
 0x157   : > { %1126 = vmatpush.bf16.msrb.mxu1 %v1725_v58 }
 0x15a   : > { %1113 = vmatpush.bf16.msrb.mxu0 %v1716_v57 }
 0x15b   : > { %1127 = vmatpush.bf16.msrb.mxu1 %v1724_v59 }
 0x1ba   : > { %v921_v61 = vpop.f32.mrf.mxu0 }
 0x1bb   : > { %v935_v63 = vpop.f32.mrf.mxu1  ;;  %v922_v0 = vadd.f32 %v921_v61, %v748_v62 }
 0x1bd   : > { %v936_v5 = vadd.f32 %v935_v63, %v922_v0 }
 0x1bf   : > { %v968_v10 = vmax.f32 %v936_v5, 0.0 }
 0x1c2   : > { %v949_v1 = vpop.f32.mrf.mxu2  ;;  %v923_v4 = vpop.f32.mrf.mxu0 }
 0x1c3   : > { %v963_v3 = vpop.f32.mrf.mxu3  ;;  %v924_v6 = vadd.f32 %v923_v4, %v748_v62  ;;  %v937_v7 = vpop.f32.mrf.mxu1  ;;  %v950_v9 = vadd.f32 %v949_v1, %v749_v2 }
 0x1c5   : > { %v938_v8 = vadd.f32 %v937_v7, %v924_v6  ;;  %v964_v14 = vadd.f32 %v963_v3, %v950_v9 }
 0x1c7   : > { %v970_v11 = vmax.f32 %v938_v8, 0.0  ;;  %v969_v18 = vmax.f32 %v964_v14, 0.0 }
 0x1c9   : > { %v972_v12 = vpack.c.bf16 %v970_v11, %v968_v10 }
 0x1ca   : > { %v951_v13 = vpop.f32.mrf.mxu2 }
 0x1cb   : > { %v952_v15 = vadd.f32 %v951_v13, %v749_v2  ;;  %v965_v16 = vpop.f32.mrf.mxu3  ;;  %1114 = vmatmul.bf16.vlgmr.msrb.gmra.mxu0 %v972_v12 }
 0x1cd   : > { %v966_v17 = vadd.f32 %v965_v16, %v952_v15 }
 0x1cf   : > { %v971_v19 = vmax.f32 %v966_v17, 0.0 }
 0x1d1   : > { %v973_v20 = vpack.c.bf16 %v971_v19, %v969_v18 }
 0x1d3   : > { %1128 = vmatmul.bf16.vlgmr.msrb.gmra.mxu1 %v973_v20 }
 0x248   : > { %v1115_v21 = vpop.f32.mrf.mxu0 }
 0x249   : > { %v1116_v23 = vadd.f32 %v1904_v22, %v1115_v21 }
 0x250   : > { %v1129_v24 = vpop.f32.mrf.mxu1  ;;  %v1117_v26 = vpop.f32.mrf.mxu0 }
 0x251   : > { %v1130_v25 = vadd.f32 %v1129_v24, %v1116_v23  ;;  %v1118_v27 = vadd.f32 %v1904_v22, %v1117_v26 }
 0x253   : > { %1134 = vst [vmem:[%s2492_s5] sm:$0xff] %v1130_v25 }
 0x258   : > { %v1131_v28 = vpop.f32.mrf.mxu1 }
 0x259   : > { %v1132_v29 = vadd.f32 %v1131_v28, %v1118_v27 }
 0x25b   : > { %1135 = vst [vmem:[%s2492_s5 + $0x8] sm:$0xff] %v1132_v29 }
 0x25c PF: > { %s2697_s22 = sld [smem:[#allocation21_spill]]  ;;  %s1149_s24 = sshll.u32 %s2492_s5, 4  ;;  %s1150_s24 = int_to_ptr.vmem [resolvable:$true] %s1149_s24 }
 0x25d   : > { %s2699_s9 = sld [smem:[#allocation35_spill]]  ;;  %s1137_s26 = scalar_lea.sflag [#allocation5], %s403_s18 }
 0x262   : > { %s1732_s11 = sshll.u32 %s2697_s22, 4 }
 0x263   : > { %s2700_s23 = smov %s2699_s9  ;;  %s1148_s13 = scalar_lea.hbm %s2699_s9, %s1732_s11 }
 0x264   : > { %s1151_s0 = sshll.u32 %s1148_s13, 4  ;;  %s2075_s10 = scalar_lea.hbm %s2700_s23, 32  ;;  %s1152_s0 = int_to_ptr.hbm [resolvable:$true] %s1151_s0 }
 0x265   : > { %s2069_s7 = sshra.s32 %s1152_s0, 4  ;;  %s2070_s7 = int_to_ptr.hbm [resolvable:$true] %s2069_s7 }
 0x266   : > { %s2071_s30 = scalar_lea.hbm %s2070_s7, 16  ;;  %p2076_p10 = scmp.lt.s32.totalorder %s2070_s7, %s2700_s23 }
 0x267   : > { %p2072_p5 = scmp.ne.s32.totalorder %s2070_s7, %s2071_s30  ;;  %p2077_p0 = scmp.lt.s32.totalorder %s2075_s10, %s2071_s30 }
 0x269   : > { %p2073_p13 = pnand %p2072_p5, %p2357_p9  ;;  %p2078_p4 = por %p2077_p0, %p2076_p10 }
 0x26b   : > { %p2074_p7 = pneg %p2073_p13 }
 0x26d   : > { %p2079_p6 = pnand %p2078_p4, %p2074_p7 }
 0x26f   : > { %2082 = shalt.err (!%p2079_p6)
}
 0x270   : > { %s2224_s18 = smov 128   ;;  %s2225_s5 = smov 8  }
 0x271   : > { %1750 = dma.vmem_to_hbm [thread:$0]  (%p2357_p9), %s1150_s24, 256, %s1152_s0, %s1137_s26, %s2224_s18, %s2224_s18, %s2225_s5  }
 0x272 PF: > { %s2701_s20 = sld [smem:[#allocation18_spill]]  ;;  %p1780_p8 = scmp.ge.s32.totalorder %s2213_s14, 2 }
 0x274   : > { %p1770_p12 = pnand %p1780_p8, %p2362_p11 }
 0x276   : > { %p1771_p2 = pneg %p1770_p12 }
 0x278   : > { %s1166_s21 = sand.u32 1, %s2701_s20  }
 0x279   : > { %s1167_s22 = scalar_lea.sflag [#allocation5], %s1166_s21 }
 0x27a   : > { %2156 = dma.done.wait (%p1771_p2), %s1167_s22, 256  }
 0x27b   : > { %2158 = vsyncadd (%p1771_p2), %s1167_s22, 4294967040  ;;  %s27_s14 = sadd.s32 1, %s2213_s14   ;;  %s2704_s27 = sld [smem:[#allocation19_spill]] }
 0x27c   : > { %p2594_p3 = scmp.ge.s32.totalorder %s27_s14, 8   ;;  %s2705_s26 = sld [smem:[#allocation27_spill]] }
 0x27d   : > { %s2706_s2 = sld [smem:[#allocation20_spill]]  ;;  %s2712_s24 = smov %s2165_s25 }
 0x27e   : > { %s2707_s9 = sld [smem:[#allocation28_spill]]  ;;  %s2717_s30 = smov %s2189_s8 }
 0x27f   : > { %s2708_s4 = sld [smem:[#allocation22_spill]]  ;;  %s2719_s10 = smov %s2205_s12 }
 0x280   : > { %s2709_s13 = sld [smem:[#allocation25_spill]] }
 0x281   : > { %s2710_s0 = sld [smem:[#allocation26_spill]]  ;;  %s2713_s25 = smov %s2704_s27 }
 0x282   : > { %s2714_s27 = smov %s2177_s28  ;;  %s2715_s28 = smov %s2181_s29 }
 0x283   : > { %s2716_s29 = smov %s2449_s3  ;;  %s2718_s8 = smov %s2706_s2 }
 0x284   :  { %26 = sbr.rel (!%p2594_p3) target bundleno = 21 (0x15), region = 126 }
 0x285   : > { %s2720_s11 = smov %s2708_s4 }
 0x286   : > { %s2721_s12 = smov %s2709_s13 }
 0x287   : > { %s2722_s13 = smov %s2710_s0 }
 0x289   :  { %1173 = vsyncpa [#allocation4], 1 }
 0x28a   :  { %1175 = vsyncpa [#allocation4 + $0x1], 1 }
 0x28b   :  { %1176 = vsyncpa [#allocation7], 1 }
 0x28c   :  { %1178 = vsyncpa [#allocation7 + $0x1], 1 }
 0x28d   :  { %1179 = vsyncpa [#allocation10], 1 }
 0x28e   :  { %1180 = vsyncpa [#allocation5], 1 }
 0x28f   :  { %1182 = vsyncpa [#allocation5 + $0x1], 1 }

</bundles_post_ra>
